<compile_context>
chip_gen: v7x
topology: tpu7x:2x2x1
jax: 0.10.0
libtpu: 0.0.40
codegen_flags: <defaults>
</compile_context>

<pallas_src>
import functools

import jax
import jax.numpy as jnp
from jax import lax
from jax.experimental import pallas as pl
from jax.experimental.pallas import tpu as pltpu


# --------------------------------------------------------------------------
# Tile picking helper: largest power-of-two-friendly divisor <= cap.
# --------------------------------------------------------------------------
def _tile(dim, cap):
    if dim <= cap:
        return dim
    t = cap
    while dim % t:
        t //= 2
    return t


# --------------------------------------------------------------------------
# Pallas kernel 1: (M, N, K)-tiled matmul, accumulating directly into the
# output block, with an optional fused per-column affine + activation epilogue.
#   out = act(A @ B [* scale + bias])
# act in {"none", "leaky", "heads"}.  "heads" = sigmoid on column 0 and
# softmax over columns 1..N-1 (the two SGAN discriminator heads fused).
# --------------------------------------------------------------------------
def _activate(y, act):
    if act == "leaky":
        return jnp.where(y > 0, y, 0.2 * y)
    if act == "heads":
        col = lax.broadcasted_iota(jnp.int32, y.shape, 1)
        # numerically stable sigmoid for column 0
        adv = jnp.where(y >= 0,
                        1.0 / (1.0 + jnp.exp(-y)),
                        jnp.exp(y) / (1.0 + jnp.exp(y)))
        # softmax over columns >= 1
        ym = jnp.where(col >= 1, y, -jnp.inf)
        m = jnp.max(ym, axis=-1, keepdims=True)
        e = jnp.exp(ym - m)                      # exp(-inf) = 0 at col 0
        soft = e / jnp.sum(e, axis=-1, keepdims=True)
        return jnp.where(col == 0, adv, soft)
    return y


def _mm_kernel(a_ref, b_ref, *rest, act, has_affine):
    if has_affine:
        scale_ref, bias_ref, o_ref = rest
    else:
        (o_ref,) = rest

    k = pl.program_id(2)

    @pl.when(k == 0)
    def _():
        o_ref[...] = jnp.zeros_like(o_ref)

    o_ref[...] += jnp.dot(a_ref[...], b_ref[...], preferred_element_type=jnp.float32)

    if has_affine or act != "none":
        @pl.when(k == pl.num_programs(2) - 1)
        def _():
            y = o_ref[...]
            if has_affine:
                y = y * scale_ref[...] + bias_ref[...]
            o_ref[...] = _activate(y, act).astype(o_ref.dtype)


def matmul_fused(a, b, scale=None, bias=None, act="none",
                 tm_cap=512, tn_cap=256, tk_cap=2048):
    M, K = a.shape
    K2, N = b.shape
    assert K == K2
    tm = _tile(M, tm_cap)
    tn = _tile(N, tn_cap)
    tk = _tile(K, tk_cap)
    if act == "heads":
        # row-wise softmax over the whole N => N must live in a single tile
        assert tn == N

    has_affine = scale is not None and bias is not None
    kernel = functools.partial(_mm_kernel, act=act, has_affine=has_affine)

    in_specs = [
        pl.BlockSpec((tm, tk), lambda m, n, k: (m, k)),
        pl.BlockSpec((tk, tn), lambda m, n, k: (k, n)),
    ]
    args = [a, b]
    if has_affine:
        in_specs += [
            pl.BlockSpec((1, tn), lambda m, n, k: (0, n)),
            pl.BlockSpec((1, tn), lambda m, n, k: (0, n)),
        ]
        args += [scale.reshape(1, N), bias.reshape(1, N)]

    return pl.pallas_call(
        kernel,
        out_shape=jax.ShapeDtypeStruct((M, N), jnp.float32),
        grid_spec=pltpu.PrefetchScalarGridSpec(
            num_scalar_prefetch=0,
            grid=(M // tm, N // tn, K // tk),
            in_specs=in_specs,
            out_specs=pl.BlockSpec((tm, tn), lambda m, n, k: (m, n)),
        ),
        compiler_params=pltpu.CompilerParams(
            dimension_semantics=("parallel", "parallel", "arbitrary"),
            vmem_limit_bytes=48 * 1024 * 1024,
        ),
    )(*args)


# --------------------------------------------------------------------------
# Pallas kernel 2: BatchNorm2d (training mode: batch statistics over N*H*W,
# biased variance, eps=1e-5) fused with LeakyReLU(0.2).
# Rows are (b, h, w), cols are channels -> axis-0 reduction == BN stats.
# Tiled over channels (each channel tile sees ALL rows, so stats stay exact).
# --------------------------------------------------------------------------
def _bn_lrelu_kernel(y_ref, gamma_ref, beta_ref, o_ref, *, eps, slope):
    y = y_ref[...]
    mean = jnp.mean(y, axis=0, keepdims=True)
    var = jnp.mean(jnp.square(y - mean), axis=0, keepdims=True)
    inv = lax.rsqrt(var + eps)
    z = (y - mean) * inv * gamma_ref[...] + beta_ref[...]
    o_ref[...] = jnp.where(z > 0, z, slope * z)


def batchnorm_leakyrelu(y, gamma, beta, eps=1e-5, slope=0.2):
    M, C = y.shape
    tc = 128 if C % 128 == 0 else C
    kernel = functools.partial(_bn_lrelu_kernel, eps=eps, slope=slope)
    return pl.pallas_call(
        kernel,
        out_shape=jax.ShapeDtypeStruct((M, C), jnp.float32),
        grid_spec=pltpu.PrefetchScalarGridSpec(
            num_scalar_prefetch=0,
            grid=(C // tc,),
            in_specs=[
                pl.BlockSpec((M, tc), lambda c: (0, c)),
                pl.BlockSpec((1, tc), lambda c: (0, c)),
                pl.BlockSpec((1, tc), lambda c: (0, c)),
            ],
            out_specs=pl.BlockSpec((M, tc), lambda c: (0, c)),
        ),
        compiler_params=pltpu.CompilerParams(dimension_semantics=("parallel",)),
    )(y, gamma.reshape(1, C), beta.reshape(1, C))


# --------------------------------------------------------------------------
# Plain-JAX glue: NHWC im2col for kernel=4, stride=2, pad=1 (zero padding).
# Column order is (kh, kw, C_in); the conv weight is transposed to match.
# TODO(synk): eliminate the im2col HBM materialization by expressing the conv
# as 16 shifted (rows x C_in) x (C_in x C_out) matmuls inside the kernel.
# --------------------------------------------------------------------------
def im2col_nhwc(x, k=4, s=2, p=1):
    B, H, W, C = x.shape
    Ho = (H + 2 * p - k) // s + 1
    Wo = (W + 2 * p - k) // s + 1
    xp = jnp.pad(x, ((0, 0), (p, p), (p, p), (0, 0)))
    patches = [xp[:, i:i + s * Ho:s, j:j + s * Wo:s, :]
               for i in range(k) for j in range(k)]          # each (B,Ho,Wo,C)
    cols = jnp.stack(patches, axis=3)                        # (B,Ho,Wo,16,C)
    cols = cols.reshape(B * Ho * Wo, k * k * C)              # col index = (kh,kw,c)
    return cols, Ho, Wo


def conv4x4_s2(x_nhwc, w, act="none"):
    """Conv2d(k=4,s=2,p=1,bias=False) via im2col + fused Pallas matmul.
    Returns rows (B*Ho*Wo, C_out) ordered (b, h, w)."""
    c_out = w.shape[0]
    cols, Ho, Wo = im2col_nhwc(x_nhwc)
    w_mat = jnp.transpose(w, (2, 3, 1, 0)).reshape(-1, c_out)   # (16*C_in, C_out)
    y = matmul_fused(cols, w_mat, act=act)
    return y, Ho, Wo


# --------------------------------------------------------------------------
# Parameter init (deterministic, synthetic) and forward pass.
# --------------------------------------------------------------------------
def init_params(key, channels, classes):
    ks = jax.random.split(key, 5)
    p = {}
    p["w1"] = 0.05 * jax.random.normal(ks[0], (128, channels, 4, 4), jnp.float32)
    p["w2"] = 0.05 * jax.random.normal(ks[1], (256, 128, 4, 4), jnp.float32)
    p["w3"] = 0.05 * jax.random.normal(ks[2], (512, 256, 4, 4), jnp.float32)
    p["gamma2"] = jnp.ones((256,), jnp.float32)     # PyTorch BN default init
    p["beta2"] = jnp.zeros((256,), jnp.float32)
    p["gamma3"] = jnp.ones((512,), jnp.float32)
    p["beta3"] = jnp.zeros((512,), jnp.float32)
    p["w_adv"] = 0.02 * jax.random.normal(ks[3], (1, 512 * 4 * 4), jnp.float32)
    p["b_adv"] = jnp.zeros((1,), jnp.float32)
    p["w_cla"] = 0.02 * jax.random.normal(ks[4], (classes + 1, 512 * 4 * 4), jnp.float32)
    p["b_cla"] = jnp.zeros((classes + 1,), jnp.float32)
    return p


def discriminator_forward(params, image):
    """image: (B, channels, 32, 32) float32, NCHW (PyTorch convention)."""
    B = image.shape[0]

    # One-time NCHW -> NHWC; activations stay NHWC (rows=(b,h,w), cols=C) after this.
    x = jnp.transpose(image, (0, 2, 3, 1))

    # Block 1: conv + LeakyReLU fused into the matmul epilogue.
    y1, H1, W1 = conv4x4_s2(x, params["w1"], act="leaky")
    x1 = y1.reshape(B, H1, W1, 128)

    # Block 2: conv (raw), then BN(train-mode batch stats) + LeakyReLU.
    y2, H2, W2 = conv4x4_s2(x1, params["w2"], act="none")
    y2 = batchnorm_leakyrelu(y2, params["gamma2"], params["beta2"])
    x2 = y2.reshape(B, H2, W2, 256)

    # Block 3: conv (raw), then BN + LeakyReLU.
    y3, H3, W3 = conv4x4_s2(x2, params["w3"], act="none")
    y3 = batchnorm_leakyrelu(y3, params["gamma3"], params["beta3"])

    # Flatten in (h, w, c) order (no activation transpose needed).
    flat = y3.reshape(B, H3 * W3 * 512)

    # Fused heads: one matmul for [adv | cla].  The head weights (PyTorch
    # (c,h,w) flatten order) are reordered to (h,w,c) to match `flat`.
    w_heads = jnp.concatenate([params["w_adv"], params["w_cla"]], axis=0)
    n_out = w_heads.shape[0]                       # 1 + (classes + 1)
    w_heads = (w_heads.reshape(n_out, 512, H3, W3)
               .transpose(0, 2, 3, 1)
               .reshape(n_out, H3 * W3 * 512))
    b_heads = jnp.concatenate([params["b_adv"], params["b_cla"]], axis=0)
    ones_h = jnp.ones((n_out,), jnp.float32)

    out = matmul_fused(flat, w_heads.T, ones_h, b_heads, act="heads", tk_cap=8192)
    out_adv = out[:, :1]
    out_cla = out[:, 1:]
    return out_adv, out_cla


if __name__ == "__main__":
    key = jax.random.PRNGKey(0)
    k_param, k_img = jax.random.split(key)

    batch, channels, classes = 2, 3, 10
    # 32x32 spatial is required so the flatten matches Linear(512*4*4, ...)
    image = jax.random.normal(k_img, (batch, channels, 32, 32), jnp.float32)
    params = init_params(k_param, channels, classes)

    out_adv, out_cla = discriminator_forward(params, image)
    out_adv = jax.block_until_ready(out_adv)
    out_cla = jax.block_until_ready(out_cla)

    assert out_adv.shape == (batch, 1)
    assert out_cla.shape == (batch, classes + 1)
    assert bool(jnp.all((out_adv > 0) & (out_adv < 1)))
    assert bool(jnp.allclose(jnp.sum(out_cla, axis=-1), 1.0, atol=1e-5))
    print("KERNEL_OK")
</pallas_src>

<mosaic_0001>
module attributes {stable_mosaic.version = 11 : i64} {
  func.func @_mm_kernel(%arg0: i32, %arg1: i32, %arg2: i32, %arg3: memref<512x48xf32, #tpu.memory_space<vmem>>, %arg4: memref<48x128xf32, #tpu.memory_space<vmem>>, %arg5: memref<512x128xf32, #tpu.memory_space<vmem>>) attributes {dimension_semantics = [#tpu.dimension_semantics<parallel>, #tpu.dimension_semantics<parallel>, #tpu.dimension_semantics<arbitrary>], iteration_bounds = array<i64: 1, 1, 1>, scalar_prefetch = 0 : i64, scratch_operands = 0 : i64, tpu.core_type = #tpu.core_type<tc>, window_params = [{transform_indices = @transform_0, window_bounds = array<i64: 512, 48>}, {transform_indices = @transform_1, window_bounds = array<i64: 48, 128>}, {transform_indices = @transform_2, window_bounds = array<i64: 512, 128>}]} {
    %c0_i32 = arith.constant 0 : i32
    %0 = arith.cmpi eq, %arg2, %c0_i32 : i32
    %1 = arith.extui %0 : i1 to i32
    %c0_i32_0 = arith.constant 0 : i32
    %2 = arith.cmpi ne, %1, %c0_i32_0 : i32
    scf.if %2 {
      %cst_10 = arith.constant 0.000000e+00 : f32
      %12 = vector.broadcast %cst_10 : f32 to vector<512x128xf32>
      %c0_11 = arith.constant 0 : index
      %c0_12 = arith.constant 0 : index
      %13 = vector.load %arg5[%c0_11, %c0_12] : memref<512x128xf32, #tpu.memory_space<vmem>>, vector<512x128xf32>
      tpu.vector_store %arg5[%c0_11, %c0_12], %12 {strides = array<i32>} : memref<512x128xf32, #tpu.memory_space<vmem>>, vector<512x128xf32>,
    } else {
    }
    %c0 = arith.constant 0 : index
    %c0_1 = arith.constant 0 : index
    %3 = vector.load %arg5[%c0, %c0_1] : memref<512x128xf32, #tpu.memory_space<vmem>>, vector<512x128xf32>
    %c0_2 = arith.constant 0 : index
    %c0_3 = arith.constant 0 : index
    %4 = vector.load %arg3[%c0_2, %c0_3] : memref<512x48xf32, #tpu.memory_space<vmem>>, vector<512x48xf32>
    %c0_4 = arith.constant 0 : index
    %c0_5 = arith.constant 0 : index
    %5 = vector.load %arg4[%c0_4, %c0_5] : memref<48x128xf32, #tpu.memory_space<vmem>>, vector<48x128xf32>
    %cst = arith.constant dense<0.000000e+00> : vector<512x128xf32>
    %6 = tpu.matmul %4, %5, %cst {dimension_numbers = #tpu.dot_dimension_numbers<[1], [0], [0], [1], [0, 0, 1, 1], [], []>} : vector<512x48xf32>, vector<48x128xf32>, vector<512x128xf32> -> vector<512x128xf32>
    %7 = arith.addf %3, %6 : vector<512x128xf32>
    %c0_6 = arith.constant 0 : index
    %c0_7 = arith.constant 0 : index
    %8 = vector.load %arg5[%c0_6, %c0_7] : memref<512x128xf32, #tpu.memory_space<vmem>>, vector<512x128xf32>
    tpu.vector_store %arg5[%c0_6, %c0_7], %7 {strides = array<i32>} : memref<512x128xf32, #tpu.memory_space<vmem>>, vector<512x128xf32>,
    %c0_i32_8 = arith.constant 0 : i32
    %9 = arith.cmpi eq, %arg2, %c0_i32_8 : i32
    %10 = arith.extui %9 : i1 to i32
    %c0_i32_9 = arith.constant 0 : i32
    %11 = arith.cmpi ne, %10, %c0_i32_9 : i32
    scf.if %11 {
      %c0_10 = arith.constant 0 : index
      %c0_11 = arith.constant 0 : index
      %12 = vector.load %arg5[%c0_10, %c0_11] : memref<512x128xf32, #tpu.memory_space<vmem>>, vector<512x128xf32>
      %cst_12 = arith.constant 0.000000e+00 : f32
      %13 = vector.broadcast %cst_12 : f32 to vector<512x128xf32>
      %14 = arith.cmpf ogt, %12, %13 : vector<512x128xf32>
      %cst_13 = arith.constant 2.000000e-01 : f32
      %15 = vector.broadcast %cst_13 : f32 to vector<512x128xf32>
      %16 = arith.mulf %15, %12 : vector<512x128xf32>
      %17 = arith.select %14, %12, %16 : vector<512x128xi1>, vector<512x128xf32>
      %c0_14 = arith.constant 0 : index
      %c0_15 = arith.constant 0 : index
      %18 = vector.load %arg5[%c0_14, %c0_15] : memref<512x128xf32, #tpu.memory_space<vmem>>, vector<512x128xf32>
      tpu.vector_store %arg5[%c0_14, %c0_15], %17 {strides = array<i32>} : memref<512x128xf32, #tpu.memory_space<vmem>>, vector<512x128xf32>,
    } else {
    }
    return
  }
  func.func @transform_0(%arg0: i32, %arg1: i32, %arg2: i32) -> (i32, i32) {
    %c0_i32 = arith.constant 0 : i32
    return %arg0, %arg2 : i32, i32
  }
  func.func @transform_1(%arg0: i32, %arg1: i32, %arg2: i32) -> (i32, i32) {
    %c0_i32 = arith.constant 0 : i32
    return %arg2, %arg1 : i32, i32
  }
  func.func @transform_2(%arg0: i32, %arg1: i32, %arg2: i32) -> (i32, i32) {
    %c0_i32 = arith.constant 0 : i32
    return %arg0, %arg1 : i32, i32
  }
}

</mosaic_0001>

<bundles_post_ra>
// kernel: tpu_custom_call.1
= control target key start
LH: loop header
LB: loop body
LE: loop exit
PB: predicated region body
PF: predicated region fallthrough
CT: control target
= control target key end

     0   :  { %vm214_vm0 = vcmask 392192   ;;  %s1851_s0 = inlined_call_operand.vmem [shape: f32[512,48], index: 0, kind: input, shape index: {}]   ;;  %s1852_s1 = inlined_call_operand.vmem [shape: f32[48,128], index: 1, kind: input, shape index: {}]   ;;  %s1853_s2 = inlined_call_operand.hbm [shape: f32[512,128], index: 2, kind: output, shape index: {}]  }
   0x1   :  { %v208_v0 = vld [vmem:[%s1852_s1] sm:$0xff]  ;;  %v209_v1 = vld [vmem:[%s1852_s1 + $0x8] sm:$0xff]  ;;  %v210_v2 = vld [vmem:[%s1852_s1 + $0x10] sm:$0xff] }
   0x2   :  { %v1501_v3 = vpack.c.bf16 %v209_v1, %v208_v0  ;;  %v211_v4 = vld [vmem:[%s1852_s1 + $0x18] sm:$0xff]  ;;  %v212_v6 = vld [vmem:[%s1852_s1 + $0x20] sm:$0xff]  ;;  %v213_v7 = vld [vmem:[%s1852_s1 + $0x28] sm:$0xff] }
   0x3   :  { %v1505_v5 = vpack.c.bf16 %v211_v4, %v210_v2  ;;  %v144_v8 = vld [vmem:[%s1851_s0] sm:$0xff]  ;;  %v1509_v10 = vpack.c.bf16 %v213_v7, %v212_v6  ;;  %v145_v11 = vld [vmem:[%s1851_s0 + $0x8] sm:$0xff]  ;;  %v146_v13 = vld [vmem:[%s1851_s0 + $0x10] sm:$0xff] }
   0x4   :  { %1502 = vmatprep.subr.bf16.mxu0 %v1501_v3  ;;  %1513 = vmatprep.subr.bf16.mxu1 %v1501_v3  ;;  %v176_v9 = vld [vmem:[%s1851_s0 + $0x100] sm:$0xff]  ;;  %v177_v12 = vld [vmem:[%s1851_s0 + $0x108] sm:$0xff]  ;;  %v178_v14 = vld [vmem:[%s1851_s0 + $0x110] sm:$0xff] }
   0x5   :  { %1504 = vmatpush3.bf16.msra.mxu0 %v1501_v3  ;;  %1516 = vmatpush3.bf16.msra.mxu1 %v1501_v3  ;;  %v147_v15 = vld [vmem:[%s1851_s0 + $0x18] sm:$0xff]  ;;  %v148_v17 = vld [vmem:[%s1851_s0 + $0x20] sm:$0xff]  ;;  %v149_v19 = vld [vmem:[%s1851_s0 + $0x28] sm:$0xff] }
   0x6   :  { %1506 = vmatprep.subr.bf16.mxu0 %v1505_v5  ;;  %1514 = vmatprep.subr.bf16.mxu1 %v1505_v5  ;;  %v179_v16 = vld [vmem:[%s1851_s0 + $0x118] sm:$0xff]  ;;  %v180_v18 = vld [vmem:[%s1851_s0 + $0x120] sm:$0xff]  ;;  %v181_v20 = vld [vmem:[%s1851_s0 + $0x128] sm:$0xff] }
   0x7   :  { %1405 = vmatprep.mubr.msk.f32.mxu0 %vm214_vm0, %v144_v8  ;;  %1453 = vmatprep.mubr.msk.f32.mxu1 %vm214_vm0, %v176_v9  ;;  %v150_v21 = vld [vmem:[%s1851_s0 + $0x30] sm:$0xff] }
   0x8   :  { %v182_v22 = vld [vmem:[%s1851_s0 + $0x130] sm:$0xff] }
   0x9   :  { %1508 = vmatpush3.bf16.msra.mxu0 %v1505_v5  ;;  %1517 = vmatpush3.bf16.msra.mxu1 %v1505_v5 }
   0xa   :  { %1510 = vmatprep.subr.bf16.mxu0 %v1509_v10  ;;  %1515 = vmatprep.subr.bf16.mxu1 %v1509_v10 }
   0xd   :  { %1512 = vmatpush3.bf16.msra.mxu0 %v1509_v10  ;;  %1518 = vmatpush3.bf16.msra.mxu1 %v1509_v10 }
  0x10   :  { %1406 = vmatmul.mubr.msk.f32.vlgmr.msra.gmra.mrb[0].mxu0 %vm214_vm0, %v145_v11  ;;  %1454 = vmatmul.mubr.msk.f32.vlgmr.msra.gmra.mrb[0].mxu1 %vm214_vm0, %v177_v12 }
  0x11   :  { %1408 = vmatprep.mubr.msk.f32.mxu0 %vm214_vm0, %v146_v13  ;;  %1456 = vmatprep.mubr.msk.f32.mxu1 %vm214_vm0, %v178_v14 }
  0x14   :  { %1409 = vmatmul.mubr.msk.f32.gmra.mrb[2].mxu0 %vm214_vm0, %v147_v15  ;;  %1457 = vmatmul.mubr.msk.f32.gmra.mrb[2].mxu1 %vm214_vm0, %v179_v16 }
  0x15   :  { %1411 = vmatprep.mubr.msk.f32.mxu0 %vm214_vm0, %v148_v17  ;;  %1459 = vmatprep.mubr.msk.f32.mxu1 %vm214_vm0, %v180_v18 }
  0x18   :  { %1412 = vmatmul.mubr.msk.f32.gmra.mrb[4].mxu0 %vm214_vm0, %v149_v19  ;;  %1460 = vmatmul.mubr.msk.f32.gmra.mrb[4].mxu1 %vm214_vm0, %v181_v20 }
  0x19   :  { %7 = vsyncpa [#allocation3], 0  ;;  %1414 = vmatprep.mubr.msk.f32.mxu0 %vm214_vm0, %v150_v21  ;;  %1462 = vmatprep.mubr.msk.f32.mxu1 %vm214_vm0, %v182_v22  ;;  %v151_v23 = vld [vmem:[%s1851_s0 + $0x38] sm:$0xff]  ;;  %v152_v25 = vld [vmem:[%s1851_s0 + $0x40] sm:$0xff] }
  0x1a   :  { %v183_v24 = vld [vmem:[%s1851_s0 + $0x138] sm:$0xff]  ;;  %v184_v26 = vld [vmem:[%s1851_s0 + $0x140] sm:$0xff]  ;;  %v153_v27 = vld [vmem:[%s1851_s0 + $0x48] sm:$0xff] }
  0x1b   :  { %v185_v28 = vld [vmem:[%s1851_s0 + $0x148] sm:$0xff]  ;;  %v154_v29 = vld [vmem:[%s1851_s0 + $0x50] sm:$0xff]  ;;  %v155_v31 = vld [vmem:[%s1851_s0 + $0x58] sm:$0xff] }
  0x1c   :  { %1415 = vmatmul.mubr.msk.f32.gmra.mrb[6].mxu0 %vm214_vm0, %v151_v23  ;;  %1463 = vmatmul.mubr.msk.f32.gmra.mrb[6].mxu1 %vm214_vm0, %v183_v24  ;;  %v186_v30 = vld [vmem:[%s1851_s0 + $0x150] sm:$0xff]  ;;  %v187_v32 = vld [vmem:[%s1851_s0 + $0x158] sm:$0xff]  ;;  %v156_v33 = vld [vmem:[%s1851_s0 + $0x60] sm:$0xff] }
  0x1d   :  { %1417 = vmatprep.mubr.msk.f32.mxu0 %vm214_vm0, %v152_v25  ;;  %1465 = vmatprep.mubr.msk.f32.mxu1 %vm214_vm0, %v184_v26  ;;  %v188_v34 = vld [vmem:[%s1851_s0 + $0x160] sm:$0xff]  ;;  %v157_v35 = vld [vmem:[%s1851_s0 + $0x68] sm:$0xff]  ;;  %v158_v37 = vld [vmem:[%s1851_s0 + $0x70] sm:$0xff] }
  0x1e   :  { %v189_v36 = vld [vmem:[%s1851_s0 + $0x168] sm:$0xff]  ;;  %v190_v38 = vld [vmem:[%s1851_s0 + $0x170] sm:$0xff]  ;;  %v159_v39 = vld [vmem:[%s1851_s0 + $0x78] sm:$0xff] }
  0x1f   :  { %v191_v40 = vld [vmem:[%s1851_s0 + $0x178] sm:$0xff]  ;;  %v160_v41 = vld [vmem:[%s1851_s0 + $0x80] sm:$0xff]  ;;  %v161_v43 = vld [vmem:[%s1851_s0 + $0x88] sm:$0xff] }
  0x20   :  { %1418 = vmatmul.mubr.msk.f32.gmra.mrb[8].mxu0 %vm214_vm0, %v153_v27  ;;  %1466 = vmatmul.mubr.msk.f32.gmra.mrb[8].mxu1 %vm214_vm0, %v185_v28  ;;  %v192_v42 = vld [vmem:[%s1851_s0 + $0x180] sm:$0xff]  ;;  %v193_v44 = vld [vmem:[%s1851_s0 + $0x188] sm:$0xff]  ;;  %v162_v45 = vld [vmem:[%s1851_s0 + $0x90] sm:$0xff] }
  0x21   :  { %1420 = vmatprep.mubr.msk.f32.mxu0 %vm214_vm0, %v154_v29  ;;  %1468 = vmatprep.mubr.msk.f32.mxu1 %vm214_vm0, %v186_v30  ;;  %v194_v46 = vld [vmem:[%s1851_s0 + $0x190] sm:$0xff]  ;;  %v163_v47 = vld [vmem:[%s1851_s0 + $0x98] sm:$0xff]  ;;  %v164_v49 = vld [vmem:[%s1851_s0 + $0xa0] sm:$0xff] }
  0x22   :  { %v195_v48 = vld [vmem:[%s1851_s0 + $0x198] sm:$0xff]  ;;  %v196_v50 = vld [vmem:[%s1851_s0 + $0x1a0] sm:$0xff]  ;;  %v165_v51 = vld [vmem:[%s1851_s0 + $0xa8] sm:$0xff] }
  0x23   :  { %v197_v52 = vld [vmem:[%s1851_s0 + $0x1a8] sm:$0xff]  ;;  %v166_v53 = vld [vmem:[%s1851_s0 + $0xb0] sm:$0xff]  ;;  %v167_v55 = vld [vmem:[%s1851_s0 + $0xb8] sm:$0xff] }
  0x24   :  { %1421 = vmatmul.mubr.msk.f32.gmra.mrb[10].mxu0 %vm214_vm0, %v155_v31  ;;  %1469 = vmatmul.mubr.msk.f32.gmra.mrb[10].mxu1 %vm214_vm0, %v187_v32  ;;  %v198_v54 = vld [vmem:[%s1851_s0 + $0x1b0] sm:$0xff]  ;;  %v199_v56 = vld [vmem:[%s1851_s0 + $0x1b8] sm:$0xff]  ;;  %v168_v57 = vld [vmem:[%s1851_s0 + $0xc0] sm:$0xff] }
  0x25   :  { %1423 = vmatprep.mubr.msk.f32.mxu0 %vm214_vm0, %v156_v33  ;;  %1471 = vmatprep.mubr.msk.f32.mxu1 %vm214_vm0, %v188_v34  ;;  %v200_v58 = vld [vmem:[%s1851_s0 + $0x1c0] sm:$0xff]  ;;  %v169_v59 = vld [vmem:[%s1851_s0 + $0xc8] sm:$0xff]  ;;  %v170_v61 = vld [vmem:[%s1851_s0 + $0xd0] sm:$0xff] }
  0x26   :  { %v201_v60 = vld [vmem:[%s1851_s0 + $0x1c8] sm:$0xff]  ;;  %v202_v62 = vld [vmem:[%s1851_s0 + $0x1d0] sm:$0xff]  ;;  %v171_v63 = vld [vmem:[%s1851_s0 + $0xd8] sm:$0xff] }
  0x27   :  { %v203_v0 = vld [vmem:[%s1851_s0 + $0x1d8] sm:$0xff]  ;;  %v172_v1 = vld [vmem:[%s1851_s0 + $0xe0] sm:$0xff]  ;;  %v173_v3 = vld [vmem:[%s1851_s0 + $0xe8] sm:$0xff] }
  0x28   :  { %1424 = vmatmul.mubr.msk.f32.gmra.mrb[12].mxu0 %vm214_vm0, %v157_v35  ;;  %1472 = vmatmul.mubr.msk.f32.gmra.mrb[12].mxu1 %vm214_vm0, %v189_v36  ;;  %v204_v2 = vld [vmem:[%s1851_s0 + $0x1e0] sm:$0xff]  ;;  %v205_v4 = vld [vmem:[%s1851_s0 + $0x1e8] sm:$0xff]  ;;  %v174_v5 = vld [vmem:[%s1851_s0 + $0xf0] sm:$0xff] }
  0x29   :  { %1426 = vmatprep.mubr.msk.f32.mxu0 %vm214_vm0, %v158_v37  ;;  %1474 = vmatprep.mubr.msk.f32.mxu1 %vm214_vm0, %v190_v38  ;;  %v206_v6 = vld [vmem:[%s1851_s0 + $0x1f0] sm:$0xff]  ;;  %v175_v7 = vld [vmem:[%s1851_s0 + $0xf8] sm:$0xff] }
  0x2a   :  { %v207_v8 = vld [vmem:[%s1851_s0 + $0x1f8] sm:$0xff]  ;;  %s1547_s0 = smov [#allocation2]  }
  0x2b   :  { %s1248_s4 = sshll.u32 %s1547_s0, 4  ;;  %s1249_s4 = int_to_ptr.vmem [resolvable:$true] %s1248_s4 }
  0x2c   :  { %1427 = vmatmul.mubr.msk.f32.gmra.mrb[14].mxu0 %vm214_vm0, %v159_v39  ;;  %1475 = vmatmul.mubr.msk.f32.gmra.mrb[14].mxu1 %vm214_vm0, %v191_v40  ;;  %s1523_s5 = scalar_lea.vmem %s1249_s4, 8192  ;;  %p1528_p1 = scmp.lt.s32.totalorder %s1249_s4, %s1249_s4 }
  0x2d   :  { %1429 = vmatprep.mubr.msk.f32.mxu0 %vm214_vm0, %v160_v41  ;;  %1477 = vmatprep.mubr.msk.f32.mxu1 %vm214_vm0, %v192_v42  ;;  %p1524_p0 = scmp.ne.s32.totalorder %s1249_s4, %s1523_s5  ;;  %p1529_p2 = scmp.lt.s32.totalorder %s1523_s5, %s1523_s5 }
  0x2f   :  { %p1530_p3 = por %p1529_p2, %p1528_p1 }
  0x30   :  { %1430 = vmatmul.mubr.msk.f32.gmra.mrb[16].mxu0 %vm214_vm0, %v161_v43  ;;  %1478 = vmatmul.mubr.msk.f32.gmra.mrb[16].mxu1 %vm214_vm0, %v193_v44 }
  0x31   :  { %1432 = vmatprep.mubr.msk.f32.mxu0 %vm214_vm0, %v162_v45  ;;  %1480 = vmatprep.mubr.msk.f32.mxu1 %vm214_vm0, %v194_v46  ;;  %p1531_p4 = pnand %p1530_p3, %p1524_p0 }
  0x34   :  { %1433 = vmatmul.mubr.msk.f32.gmra.mrb[18].mxu0 %vm214_vm0, %v163_v47  ;;  %1481 = vmatmul.mubr.msk.f32.gmra.mrb[18].mxu1 %vm214_vm0, %v195_v48 }
  0x35   :  { %1435 = vmatprep.mubr.msk.f32.mxu0 %vm214_vm0, %v164_v49  ;;  %1483 = vmatprep.mubr.msk.f32.mxu1 %vm214_vm0, %v196_v50 }
  0x38   :  { %1436 = vmatmul.mubr.msk.f32.gmra.mrb[20].mxu0 %vm214_vm0, %v165_v51  ;;  %1484 = vmatmul.mubr.msk.f32.gmra.mrb[20].mxu1 %vm214_vm0, %v197_v52 }
  0x39   :  { %1438 = vmatprep.mubr.msk.f32.mxu0 %vm214_vm0, %v166_v53  ;;  %1486 = vmatprep.mubr.msk.f32.mxu1 %vm214_vm0, %v198_v54 }
  0x3c   :  { %1439 = vmatmul.mubr.msk.f32.gmra.mrb[22].mxu0 %vm214_vm0, %v167_v55  ;;  %1487 = vmatmul.mubr.msk.f32.gmra.mrb[22].mxu1 %vm214_vm0, %v199_v56 }
  0x3d   :  { %1441 = vmatprep.mubr.msk.f32.mxu0 %vm214_vm0, %v168_v57  ;;  %1489 = vmatprep.mubr.msk.f32.mxu1 %vm214_vm0, %v200_v58 }
  0x40   :  { %1442 = vmatmul.mubr.msk.f32.gmra.mrb[24].mxu0 %vm214_vm0, %v169_v59  ;;  %1490 = vmatmul.mubr.msk.f32.gmra.mrb[24].mxu1 %vm214_vm0, %v201_v60 }
  0x41   :  { %1444 = vmatprep.mubr.msk.f32.mxu0 %vm214_vm0, %v170_v61  ;;  %1492 = vmatprep.mubr.msk.f32.mxu1 %vm214_vm0, %v202_v62 }
  0x44   :  { %1445 = vmatmul.mubr.msk.f32.gmra.mrb[26].mxu0 %vm214_vm0, %v171_v63  ;;  %1493 = vmatmul.mubr.msk.f32.gmra.mrb[26].mxu1 %vm214_vm0, %v203_v0 }
  0x45   :  { %1447 = vmatprep.mubr.msk.f32.mxu0 %vm214_vm0, %v172_v1  ;;  %1495 = vmatprep.mubr.msk.f32.mxu1 %vm214_vm0, %v204_v2 }
  0x48   :  { %1448 = vmatmul.mubr.msk.f32.gmra.mrb[28].mxu0 %vm214_vm0, %v173_v3  ;;  %1496 = vmatmul.mubr.msk.f32.gmra.mrb[28].mxu1 %vm214_vm0, %v205_v4 }
  0x49   :  { %1450 = vmatprep.mubr.msk.f32.mxu0 %vm214_vm0, %v174_v5  ;;  %1498 = vmatprep.mubr.msk.f32.mxu1 %vm214_vm0, %v206_v6 }
  0x4c   :  { %1451 = vmatmul.mubr.msk.f32.gmra.mrb[30].mxu0 %vm214_vm0, %v175_v7  ;;  %1499 = vmatmul.mubr.msk.f32.gmra.mrb[30].mxu1 %vm214_vm0, %v207_v8 }
  0xe3   :  { %v1407_v9 = vpop.f32.mrb[0].mxu0  ;;  %v1455_v10 = vpop.f32.mrb[0].mxu1 }
  0xe4   :  { %v473_v11 = vpop.f32.mrb[1].mxu0  ;;  %v633_v12 = vpop.f32.mrb[1].mxu1  ;;  %vm988_vm1 = vcmp.gt.f32.partialorder %v1407_v9, 0.0  ;;  %v1052_v13 = vmul.f32 0.2, %v1407_v9  ;;  %vm1020_vm2 = vcmp.gt.f32.partialorder %v1455_v10, 0.0 }
  0xe5   :  { %v1084_v14 = vmul.f32 0.2, %v1455_v10  ;;  %vm987_vm3 = vcmp.gt.f32.partialorder %v473_v11, 0.0  ;;  %v1051_v15 = vmul.f32 0.2, %v473_v11  ;;  %vm1019_vm4 = vcmp.gt.f32.partialorder %v633_v12, 0.0 }
  0xe6   :  { %v1083_v16 = vmul.f32 0.2, %v633_v12  ;;  %v1116_v17 = vsel %vm988_vm1, %v1407_v9, %v1052_v13 }
  0xe7   :  { %v1148_v18 = vsel %vm1020_vm2, %v1455_v10, %v1084_v14  ;;  %v1410_v19 = vpop.f32.mrb[2].mxu0  ;;  %v1458_v20 = vpop.f32.mrb[2].mxu1  ;;  %1180 = vst [vmem:[#allocation2 + $0x8] sm:$0xff] %v1116_v17  ;;  %v1115_v21 = vsel %vm987_vm3, %v473_v11, %v1051_v15 }
  0xe8   :  { %1212 = vst [vmem:[#allocation2 + $0x108] sm:$0xff] %v1148_v18  ;;  %v1147_v22 = vsel %vm1019_vm4, %v633_v12, %v1083_v16  ;;  %v483_v23 = vpop.f32.mrb[3].mxu0  ;;  %v643_v24 = vpop.f32.mrb[3].mxu1  ;;  %1179 = vst [vmem:[#allocation2] sm:$0xff] %v1115_v21  ;;  %vm990_vm5 = vcmp.gt.f32.partialorder %v1410_v19, 0.0  ;;  %vm1022_vm6 = vcmp.gt.f32.partialorder %v1458_v20, 0.0 }
  0xe9   :  { %1211 = vst [vmem:[#allocation2 + $0x100] sm:$0xff] %v1147_v22  ;;  %v1054_v25 = vmul.f32 0.2, %v1410_v19  ;;  %v1086_v26 = vmul.f32 0.2, %v1458_v20  ;;  %vm989_vm7 = vcmp.gt.f32.partialorder %v483_v23, 0.0 }
  0xea   :  { %v1053_v27 = vmul.f32 0.2, %v483_v23  ;;  %vm1021_vm8 = vcmp.gt.f32.partialorder %v643_v24, 0.0  ;;  %v1085_v28 = vmul.f32 0.2, %v643_v24 }
  0xeb   :  { %v1118_v29 = vsel %vm990_vm5, %v1410_v19, %v1054_v25  ;;  %v1150_v30 = vsel %vm1022_vm6, %v1458_v20, %v1086_v26  ;;  %v1413_v31 = vpop.f32.mrb[4].mxu0  ;;  %v1461_v32 = vpop.f32.mrb[4].mxu1 }
  0xec   :  { %1182 = vst [vmem:[#allocation2 + $0x18] sm:$0xff] %v1118_v29  ;;  %1214 = vst [vmem:[#allocation2 + $0x118] sm:$0xff] %v1150_v30  ;;  %v1117_v33 = vsel %vm989_vm7, %v483_v23, %v1053_v27  ;;  %v1149_v34 = vsel %vm1021_vm8, %v643_v24, %v1085_v28  ;;  %v493_v35 = vpop.f32.mrb[5].mxu0  ;;  %v653_v36 = vpop.f32.mrb[5].mxu1  ;;  %vm992_vm9 = vcmp.gt.f32.partialorder %v1413_v31, 0.0  ;;  %vm1024_vm10 = vcmp.gt.f32.partialorder %v1461_v32, 0.0 }
  0xed   :  { %1181 = vst [vmem:[#allocation2 + $0x10] sm:$0xff] %v1117_v33  ;;  %1213 = vst [vmem:[#allocation2 + $0x110] sm:$0xff] %v1149_v34  ;;  %v1056_v39 = vmul.f32 0.2, %v1413_v31  ;;  %v1088_v40 = vmul.f32 0.2, %v1461_v32 }
  0xee   :  { %vm991_vm11 = vcmp.gt.f32.partialorder %v493_v35, 0.0  ;;  %v1055_v41 = vmul.f32 0.2, %v493_v35  ;;  %vm1023_vm12 = vcmp.gt.f32.partialorder %v653_v36, 0.0  ;;  %v1087_v42 = vmul.f32 0.2, %v653_v36 }
  0xef   :  { %v1416_v37 = vpop.f32.mrb[6].mxu0  ;;  %v1464_v38 = vpop.f32.mrb[6].mxu1  ;;  %v1120_v43 = vsel %vm992_vm9, %v1413_v31, %v1056_v39  ;;  %v1152_v44 = vsel %vm1024_vm10, %v1461_v32, %v1088_v40 }
  0xf0   :  { %v503_v45 = vpop.f32.mrb[7].mxu0  ;;  %v663_v46 = vpop.f32.mrb[7].mxu1  ;;  %1184 = vst [vmem:[#allocation2 + $0x28] sm:$0xff] %v1120_v43  ;;  %1216 = vst [vmem:[#allocation2 + $0x128] sm:$0xff] %v1152_v44  ;;  %v1119_v47 = vsel %vm991_vm11, %v493_v35, %v1055_v41  ;;  %v1151_v48 = vsel %vm1023_vm12, %v653_v36, %v1087_v42  ;;  %vm994_vm13 = vcmp.gt.f32.partialorder %v1416_v37, 0.0  ;;  %vm1026_vm14 = vcmp.gt.f32.partialorder %v1464_v38, 0.0 }
  0xf1   :  { %1183 = vst [vmem:[#allocation2 + $0x20] sm:$0xff] %v1119_v47  ;;  %1215 = vst [vmem:[#allocation2 + $0x120] sm:$0xff] %v1151_v48  ;;  %v1058_v51 = vmul.f32 0.2, %v1416_v37  ;;  %v1090_v52 = vmul.f32 0.2, %v1464_v38 }
  0xf2   :  { %vm993_vm15 = vcmp.gt.f32.partialorder %v503_v45, 0.0  ;;  %v1057_v53 = vmul.f32 0.2, %v503_v45  ;;  %vm1025_vm0 = vcmp.gt.f32.partialorder %v663_v46, 0.0  ;;  %v1089_v54 = vmul.f32 0.2, %v663_v46 }
  0xf3   :  { %v1419_v49 = vpop.f32.mrb[8].mxu0  ;;  %v1467_v50 = vpop.f32.mrb[8].mxu1  ;;  %v1122_v55 = vsel %vm994_vm13, %v1416_v37, %v1058_v51  ;;  %v1154_v56 = vsel %vm1026_vm14, %v1464_v38, %v1090_v52 }
  0xf4   :  { %v513_v57 = vpop.f32.mrb[9].mxu0  ;;  %v673_v58 = vpop.f32.mrb[9].mxu1  ;;  %1186 = vst [vmem:[#allocation2 + $0x38] sm:$0xff] %v1122_v55  ;;  %1218 = vst [vmem:[#allocation2 + $0x138] sm:$0xff] %v1154_v56  ;;  %v1121_v59 = vsel %vm993_vm15, %v503_v45, %v1057_v53  ;;  %v1153_v60 = vsel %vm1025_vm0, %v663_v46, %v1089_v54  ;;  %vm996_vm1 = vcmp.gt.f32.partialorder %v1419_v49, 0.0  ;;  %vm1028_vm2 = vcmp.gt.f32.partialorder %v1467_v50, 0.0 }
  0xf5   :  { %1185 = vst [vmem:[#allocation2 + $0x30] sm:$0xff] %v1121_v59  ;;  %1217 = vst [vmem:[#allocation2 + $0x130] sm:$0xff] %v1153_v60  ;;  %v1060_v63 = vmul.f32 0.2, %v1419_v49  ;;  %v1092_v0 = vmul.f32 0.2, %v1467_v50 }
  0xf6   :  { %vm995_vm3 = vcmp.gt.f32.partialorder %v513_v57, 0.0  ;;  %v1059_v1 = vmul.f32 0.2, %v513_v57  ;;  %vm1027_vm4 = vcmp.gt.f32.partialorder %v673_v58, 0.0  ;;  %v1091_v2 = vmul.f32 0.2, %v673_v58 }
  0xf7   :  { %v1422_v61 = vpop.f32.mrb[10].mxu0  ;;  %v1470_v62 = vpop.f32.mrb[10].mxu1  ;;  %v1124_v3 = vsel %vm996_vm1, %v1419_v49, %v1060_v63  ;;  %v1156_v4 = vsel %vm1028_vm2, %v1467_v50, %v1092_v0 }
  0xf8   :  { %v523_v5 = vpop.f32.mrb[11].mxu0  ;;  %v683_v6 = vpop.f32.mrb[11].mxu1  ;;  %1188 = vst [vmem:[#allocation2 + $0x48] sm:$0xff] %v1124_v3  ;;  %1220 = vst [vmem:[#allocation2 + $0x148] sm:$0xff] %v1156_v4  ;;  %v1123_v7 = vsel %vm995_vm3, %v513_v57, %v1059_v1  ;;  %v1155_v8 = vsel %vm1027_vm4, %v673_v58, %v1091_v2  ;;  %vm998_vm5 = vcmp.gt.f32.partialorder %v1422_v61, 0.0  ;;  %vm1030_vm6 = vcmp.gt.f32.partialorder %v1470_v62, 0.0 }
  0xf9   :  { %1187 = vst [vmem:[#allocation2 + $0x40] sm:$0xff] %v1123_v7  ;;  %1219 = vst [vmem:[#allocation2 + $0x140] sm:$0xff] %v1155_v8  ;;  %v1062_v11 = vmul.f32 0.2, %v1422_v61  ;;  %v1094_v12 = vmul.f32 0.2, %v1470_v62 }
  0xfa   :  { %vm997_vm7 = vcmp.gt.f32.partialorder %v523_v5, 0.0  ;;  %v1061_v13 = vmul.f32 0.2, %v523_v5  ;;  %vm1029_vm8 = vcmp.gt.f32.partialorder %v683_v6, 0.0  ;;  %v1093_v14 = vmul.f32 0.2, %v683_v6 }
  0xfb   :  { %v1425_v9 = vpop.f32.mrb[12].mxu0  ;;  %v1473_v10 = vpop.f32.mrb[12].mxu1  ;;  %v1126_v15 = vsel %vm998_vm5, %v1422_v61, %v1062_v11  ;;  %v1158_v16 = vsel %vm1030_vm6, %v1470_v62, %v1094_v12 }
  0xfc   :  { %v533_v17 = vpop.f32.mrb[13].mxu0  ;;  %v693_v18 = vpop.f32.mrb[13].mxu1  ;;  %1190 = vst [vmem:[#allocation2 + $0x58] sm:$0xff] %v1126_v15  ;;  %1222 = vst [vmem:[#allocation2 + $0x158] sm:$0xff] %v1158_v16  ;;  %v1125_v19 = vsel %vm997_vm7, %v523_v5, %v1061_v13  ;;  %v1157_v20 = vsel %vm1029_vm8, %v683_v6, %v1093_v14  ;;  %vm1000_vm9 = vcmp.gt.f32.partialorder %v1425_v9, 0.0  ;;  %vm1032_vm10 = vcmp.gt.f32.partialorder %v1473_v10, 0.0 }
  0xfd   :  { %1189 = vst [vmem:[#allocation2 + $0x50] sm:$0xff] %v1125_v19  ;;  %1221 = vst [vmem:[#allocation2 + $0x150] sm:$0xff] %v1157_v20  ;;  %v1064_v23 = vmul.f32 0.2, %v1425_v9  ;;  %v1096_v24 = vmul.f32 0.2, %v1473_v10 }
  0xfe   :  { %vm999_vm11 = vcmp.gt.f32.partialorder %v533_v17, 0.0  ;;  %v1063_v25 = vmul.f32 0.2, %v533_v17  ;;  %vm1031_vm12 = vcmp.gt.f32.partialorder %v693_v18, 0.0  ;;  %v1095_v26 = vmul.f32 0.2, %v693_v18 }
  0xff   :  { %v1428_v21 = vpop.f32.mrb[14].mxu0  ;;  %v1476_v22 = vpop.f32.mrb[14].mxu1  ;;  %v1128_v27 = vsel %vm1000_vm9, %v1425_v9, %v1064_v23  ;;  %v1160_v28 = vsel %vm1032_vm10, %v1473_v10, %v1096_v24 }
 0x100   :  { %v543_v29 = vpop.f32.mrb[15].mxu0  ;;  %v703_v30 = vpop.f32.mrb[15].mxu1  ;;  %1192 = vst [vmem:[#allocation2 + $0x68] sm:$0xff] %v1128_v27  ;;  %1224 = vst [vmem:[#allocation2 + $0x168] sm:$0xff] %v1160_v28  ;;  %v1127_v31 = vsel %vm999_vm11, %v533_v17, %v1063_v25  ;;  %v1159_v32 = vsel %vm1031_vm12, %v693_v18, %v1095_v26  ;;  %vm1002_vm13 = vcmp.gt.f32.partialorder %v1428_v21, 0.0  ;;  %vm1034_vm14 = vcmp.gt.f32.partialorder %v1476_v22, 0.0 }
 0x101   :  { %1191 = vst [vmem:[#allocation2 + $0x60] sm:$0xff] %v1127_v31  ;;  %1223 = vst [vmem:[#allocation2 + $0x160] sm:$0xff] %v1159_v32  ;;  %v1066_v35 = vmul.f32 0.2, %v1428_v21  ;;  %v1098_v36 = vmul.f32 0.2, %v1476_v22 }
 0x102   :  { %vm1001_vm15 = vcmp.gt.f32.partialorder %v543_v29, 0.0  ;;  %v1065_v37 = vmul.f32 0.2, %v543_v29  ;;  %vm1033_vm0 = vcmp.gt.f32.partialorder %v703_v30, 0.0  ;;  %v1097_v38 = vmul.f32 0.2, %v703_v30 }
 0x103   :  { %v1431_v33 = vpop.f32.mrb[16].mxu0  ;;  %v1479_v34 = vpop.f32.mrb[16].mxu1  ;;  %v1130_v39 = vsel %vm1002_vm13, %v1428_v21, %v1066_v35  ;;  %v1162_v40 = vsel %vm1034_vm14, %v1476_v22, %v1098_v36 }
 0x104   :  { %v553_v41 = vpop.f32.mrb[17].mxu0  ;;  %v713_v42 = vpop.f32.mrb[17].mxu1  ;;  %1194 = vst [vmem:[#allocation2 + $0x78] sm:$0xff] %v1130_v39  ;;  %1226 = vst [vmem:[#allocation2 + $0x178] sm:$0xff] %v1162_v40  ;;  %v1129_v43 = vsel %vm1001_vm15, %v543_v29, %v1065_v37  ;;  %v1161_v44 = vsel %vm1033_vm0, %v703_v30, %v1097_v38  ;;  %vm1004_vm1 = vcmp.gt.f32.partialorder %v1431_v33, 0.0  ;;  %vm1036_vm2 = vcmp.gt.f32.partialorder %v1479_v34, 0.0 }
 0x105   :  { %1193 = vst [vmem:[#allocation2 + $0x70] sm:$0xff] %v1129_v43  ;;  %1225 = vst [vmem:[#allocation2 + $0x170] sm:$0xff] %v1161_v44  ;;  %v1068_v47 = vmul.f32 0.2, %v1431_v33  ;;  %v1100_v48 = vmul.f32 0.2, %v1479_v34 }
 0x106   :  { %vm1003_vm3 = vcmp.gt.f32.partialorder %v553_v41, 0.0  ;;  %v1067_v49 = vmul.f32 0.2, %v553_v41  ;;  %vm1035_vm4 = vcmp.gt.f32.partialorder %v713_v42, 0.0  ;;  %v1099_v50 = vmul.f32 0.2, %v713_v42 }
 0x107   :  { %v1434_v45 = vpop.f32.mrb[18].mxu0  ;;  %v1482_v46 = vpop.f32.mrb[18].mxu1  ;;  %v1132_v51 = vsel %vm1004_vm1, %v1431_v33, %v1068_v47  ;;  %v1164_v52 = vsel %vm1036_vm2, %v1479_v34, %v1100_v48 }
 0x108   :  { %v563_v53 = vpop.f32.mrb[19].mxu0  ;;  %v723_v54 = vpop.f32.mrb[19].mxu1  ;;  %1196 = vst [vmem:[#allocation2 + $0x88] sm:$0xff] %v1132_v51  ;;  %1228 = vst [vmem:[#allocation2 + $0x188] sm:$0xff] %v1164_v52  ;;  %v1131_v55 = vsel %vm1003_vm3, %v553_v41, %v1067_v49  ;;  %v1163_v56 = vsel %vm1035_vm4, %v713_v42, %v1099_v50  ;;  %vm1006_vm5 = vcmp.gt.f32.partialorder %v1434_v45, 0.0  ;;  %vm1038_vm6 = vcmp.gt.f32.partialorder %v1482_v46, 0.0 }
 0x109   :  { %1195 = vst [vmem:[#allocation2 + $0x80] sm:$0xff] %v1131_v55  ;;  %1227 = vst [vmem:[#allocation2 + $0x180] sm:$0xff] %v1163_v56  ;;  %v1070_v59 = vmul.f32 0.2, %v1434_v45  ;;  %v1102_v60 = vmul.f32 0.2, %v1482_v46 }
 0x10a   :  { %vm1005_vm7 = vcmp.gt.f32.partialorder %v563_v53, 0.0  ;;  %v1069_v61 = vmul.f32 0.2, %v563_v53  ;;  %vm1037_vm8 = vcmp.gt.f32.partialorder %v723_v54, 0.0  ;;  %v1101_v62 = vmul.f32 0.2, %v723_v54 }
 0x10b   :  { %v1437_v57 = vpop.f32.mrb[20].mxu0  ;;  %v1485_v58 = vpop.f32.mrb[20].mxu1  ;;  %v1134_v63 = vsel %vm1006_vm5, %v1434_v45, %v1070_v59  ;;  %v1166_v0 = vsel %vm1038_vm6, %v1482_v46, %v1102_v60 }
 0x10c   :  { %v573_v1 = vpop.f32.mrb[21].mxu0  ;;  %v733_v2 = vpop.f32.mrb[21].mxu1  ;;  %1198 = vst [vmem:[#allocation2 + $0x98] sm:$0xff] %v1134_v63  ;;  %1230 = vst [vmem:[#allocation2 + $0x198] sm:$0xff] %v1166_v0  ;;  %v1133_v3 = vsel %vm1005_vm7, %v563_v53, %v1069_v61  ;;  %v1165_v4 = vsel %vm1037_vm8, %v723_v54, %v1101_v62  ;;  %vm1008_vm9 = vcmp.gt.f32.partialorder %v1437_v57, 0.0  ;;  %vm1040_vm10 = vcmp.gt.f32.partialorder %v1485_v58, 0.0 }
 0x10d   :  { %1197 = vst [vmem:[#allocation2 + $0x90] sm:$0xff] %v1133_v3  ;;  %1229 = vst [vmem:[#allocation2 + $0x190] sm:$0xff] %v1165_v4  ;;  %v1072_v7 = vmul.f32 0.2, %v1437_v57  ;;  %v1104_v8 = vmul.f32 0.2, %v1485_v58 }
 0x10e   :  { %vm1007_vm11 = vcmp.gt.f32.partialorder %v573_v1, 0.0  ;;  %v1071_v9 = vmul.f32 0.2, %v573_v1  ;;  %vm1039_vm12 = vcmp.gt.f32.partialorder %v733_v2, 0.0  ;;  %v1103_v10 = vmul.f32 0.2, %v733_v2 }
 0x10f   :  { %v1440_v5 = vpop.f32.mrb[22].mxu0  ;;  %v1488_v6 = vpop.f32.mrb[22].mxu1  ;;  %v1136_v11 = vsel %vm1008_vm9, %v1437_v57, %v1072_v7  ;;  %v1168_v12 = vsel %vm1040_vm10, %v1485_v58, %v1104_v8 }
 0x110   :  { %v583_v13 = vpop.f32.mrb[23].mxu0  ;;  %v743_v14 = vpop.f32.mrb[23].mxu1  ;;  %1200 = vst [vmem:[#allocation2 + $0xa8] sm:$0xff] %v1136_v11  ;;  %1232 = vst [vmem:[#allocation2 + $0x1a8] sm:$0xff] %v1168_v12  ;;  %v1135_v15 = vsel %vm1007_vm11, %v573_v1, %v1071_v9  ;;  %v1167_v16 = vsel %vm1039_vm12, %v733_v2, %v1103_v10  ;;  %vm1010_vm13 = vcmp.gt.f32.partialorder %v1440_v5, 0.0  ;;  %vm1042_vm14 = vcmp.gt.f32.partialorder %v1488_v6, 0.0 }
 0x111   :  { %1199 = vst [vmem:[#allocation2 + $0xa0] sm:$0xff] %v1135_v15  ;;  %1231 = vst [vmem:[#allocation2 + $0x1a0] sm:$0xff] %v1167_v16  ;;  %v1074_v19 = vmul.f32 0.2, %v1440_v5  ;;  %v1106_v20 = vmul.f32 0.2, %v1488_v6 }
 0x112   :  { %vm1009_vm15 = vcmp.gt.f32.partialorder %v583_v13, 0.0  ;;  %v1073_v21 = vmul.f32 0.2, %v583_v13  ;;  %vm1041_vm0 = vcmp.gt.f32.partialorder %v743_v14, 0.0  ;;  %v1105_v22 = vmul.f32 0.2, %v743_v14 }
 0x113   :  { %v1443_v17 = vpop.f32.mrb[24].mxu0  ;;  %v1491_v18 = vpop.f32.mrb[24].mxu1  ;;  %v1138_v23 = vsel %vm1010_vm13, %v1440_v5, %v1074_v19  ;;  %v1170_v24 = vsel %vm1042_vm14, %v1488_v6, %v1106_v20 }
 0x114   :  { %v593_v25 = vpop.f32.mrb[25].mxu0  ;;  %v753_v26 = vpop.f32.mrb[25].mxu1  ;;  %1202 = vst [vmem:[#allocation2 + $0xb8] sm:$0xff] %v1138_v23  ;;  %1234 = vst [vmem:[#allocation2 + $0x1b8] sm:$0xff] %v1170_v24  ;;  %v1137_v27 = vsel %vm1009_vm15, %v583_v13, %v1073_v21  ;;  %v1169_v28 = vsel %vm1041_vm0, %v743_v14, %v1105_v22  ;;  %vm1012_vm1 = vcmp.gt.f32.partialorder %v1443_v17, 0.0  ;;  %vm1044_vm2 = vcmp.gt.f32.partialorder %v1491_v18, 0.0 }
 0x115   :  { %1201 = vst [vmem:[#allocation2 + $0xb0] sm:$0xff] %v1137_v27  ;;  %1233 = vst [vmem:[#allocation2 + $0x1b0] sm:$0xff] %v1169_v28  ;;  %v1076_v31 = vmul.f32 0.2, %v1443_v17  ;;  %v1108_v32 = vmul.f32 0.2, %v1491_v18 }
 0x116   :  { %vm1011_vm3 = vcmp.gt.f32.partialorder %v593_v25, 0.0  ;;  %v1075_v33 = vmul.f32 0.2, %v593_v25  ;;  %vm1043_vm4 = vcmp.gt.f32.partialorder %v753_v26, 0.0  ;;  %v1107_v34 = vmul.f32 0.2, %v753_v26 }
 0x117   :  { %v1446_v29 = vpop.f32.mrb[26].mxu0  ;;  %v1494_v30 = vpop.f32.mrb[26].mxu1  ;;  %v1140_v35 = vsel %vm1012_vm1, %v1443_v17, %v1076_v31  ;;  %v1172_v36 = vsel %vm1044_vm2, %v1491_v18, %v1108_v32 }
 0x118   :  { %v603_v37 = vpop.f32.mrb[27].mxu0  ;;  %v763_v38 = vpop.f32.mrb[27].mxu1  ;;  %1204 = vst [vmem:[#allocation2 + $0xc8] sm:$0xff] %v1140_v35  ;;  %1236 = vst [vmem:[#allocation2 + $0x1c8] sm:$0xff] %v1172_v36  ;;  %v1139_v39 = vsel %vm1011_vm3, %v593_v25, %v1075_v33  ;;  %v1171_v40 = vsel %vm1043_vm4, %v753_v26, %v1107_v34  ;;  %vm1014_vm5 = vcmp.gt.f32.partialorder %v1446_v29, 0.0  ;;  %vm1046_vm6 = vcmp.gt.f32.partialorder %v1494_v30, 0.0 }
 0x119   :  { %1203 = vst [vmem:[#allocation2 + $0xc0] sm:$0xff] %v1139_v39  ;;  %1235 = vst [vmem:[#allocation2 + $0x1c0] sm:$0xff] %v1171_v40  ;;  %v1078_v43 = vmul.f32 0.2, %v1446_v29  ;;  %v1110_v44 = vmul.f32 0.2, %v1494_v30 }
 0x11a   :  { %vm1013_vm7 = vcmp.gt.f32.partialorder %v603_v37, 0.0  ;;  %v1077_v45 = vmul.f32 0.2, %v603_v37  ;;  %vm1045_vm8 = vcmp.gt.f32.partialorder %v763_v38, 0.0  ;;  %v1109_v46 = vmul.f32 0.2, %v763_v38 }
 0x11b   :  { %v1449_v41 = vpop.f32.mrb[28].mxu0  ;;  %v1497_v42 = vpop.f32.mrb[28].mxu1  ;;  %v1142_v47 = vsel %vm1014_vm5, %v1446_v29, %v1078_v43  ;;  %v1174_v48 = vsel %vm1046_vm6, %v1494_v30, %v1110_v44 }
 0x11c   :  { %v613_v49 = vpop.f32.mrb[29].mxu0  ;;  %v773_v50 = vpop.f32.mrb[29].mxu1  ;;  %1206 = vst [vmem:[#allocation2 + $0xd8] sm:$0xff] %v1142_v47  ;;  %1238 = vst [vmem:[#allocation2 + $0x1d8] sm:$0xff] %v1174_v48  ;;  %v1141_v51 = vsel %vm1013_vm7, %v603_v37, %v1077_v45  ;;  %v1173_v52 = vsel %vm1045_vm8, %v763_v38, %v1109_v46  ;;  %vm1016_vm9 = vcmp.gt.f32.partialorder %v1449_v41, 0.0  ;;  %vm1048_vm10 = vcmp.gt.f32.partialorder %v1497_v42, 0.0 }
 0x11d   :  { %1205 = vst [vmem:[#allocation2 + $0xd0] sm:$0xff] %v1141_v51  ;;  %1237 = vst [vmem:[#allocation2 + $0x1d0] sm:$0xff] %v1173_v52  ;;  %v1080_v55 = vmul.f32 0.2, %v1449_v41  ;;  %v1112_v56 = vmul.f32 0.2, %v1497_v42 }
 0x11e   :  { %vm1015_vm11 = vcmp.gt.f32.partialorder %v613_v49, 0.0  ;;  %v1079_v57 = vmul.f32 0.2, %v613_v49  ;;  %vm1047_vm12 = vcmp.gt.f32.partialorder %v773_v50, 0.0  ;;  %v1111_v58 = vmul.f32 0.2, %v773_v50 }
 0x11f   :  { %v1452_v53 = vpop.f32.mrb[30].mxu0  ;;  %v1500_v54 = vpop.f32.mrb[30].mxu1  ;;  %v1144_v59 = vsel %vm1016_vm9, %v1449_v41, %v1080_v55  ;;  %v1176_v60 = vsel %vm1048_vm10, %v1497_v42, %v1112_v56 }
 0x120   :  { %v623_v61 = vpop.f32.mrb[31].mxu0  ;;  %v783_v62 = vpop.f32.mrb[31].mxu1  ;;  %1208 = vst [vmem:[#allocation2 + $0xe8] sm:$0xff] %v1144_v59  ;;  %1240 = vst [vmem:[#allocation2 + $0x1e8] sm:$0xff] %v1176_v60  ;;  %v1143_v63 = vsel %vm1015_vm11, %v613_v49, %v1079_v57  ;;  %v1175_v0 = vsel %vm1047_vm12, %v773_v50, %v1111_v58  ;;  %vm1018_vm13 = vcmp.gt.f32.partialorder %v1452_v53, 0.0  ;;  %vm1050_vm14 = vcmp.gt.f32.partialorder %v1500_v54, 0.0 }
 0x121   :  { %1207 = vst [vmem:[#allocation2 + $0xe0] sm:$0xff] %v1143_v63  ;;  %1239 = vst [vmem:[#allocation2 + $0x1e0] sm:$0xff] %v1175_v0  ;;  %v1082_v1 = vmul.f32 0.2, %v1452_v53  ;;  %v1114_v2 = vmul.f32 0.2, %v1500_v54 }
 0x122   :  { %vm1017_vm15 = vcmp.gt.f32.partialorder %v623_v61, 0.0  ;;  %v1081_v3 = vmul.f32 0.2, %v623_v61  ;;  %vm1049_vm0 = vcmp.gt.f32.partialorder %v783_v62, 0.0  ;;  %v1113_v4 = vmul.f32 0.2, %v783_v62 }
 0x123   :  { %v1146_v5 = vsel %vm1018_vm13, %v1452_v53, %v1082_v1  ;;  %v1178_v6 = vsel %vm1050_vm14, %v1500_v54, %v1114_v2 }
 0x124   :  { %1210 = vst [vmem:[#allocation2 + $0xf8] sm:$0xff] %v1146_v5  ;;  %1242 = vst [vmem:[#allocation2 + $0x1f8] sm:$0xff] %v1178_v6  ;;  %v1145_v7 = vsel %vm1017_vm15, %v623_v61, %v1081_v3  ;;  %v1177_v8 = vsel %vm1049_vm0, %v783_v62, %v1113_v4 }
 0x125   :  { %1209 = vst [vmem:[#allocation2 + $0xf0] sm:$0xff] %v1145_v7  ;;  %1241 = vst [vmem:[#allocation2 + $0x1f0] sm:$0xff] %v1177_v8 }
 0x126   :  { %1534 = shalt.err (!%p1531_p4)
}
 0x127   :  { %s1535_s8 = scalar_lea.hbm %s1853_s2, 8192 }
 0x128   :  { %p1536_p5 = scmp.ne.s32.totalorder %s1853_s2, %s1535_s8  ;;  %p1539_p6 = scmp.lt.u32.totalorder %s1535_s8, %s1853_s2 }
 0x12a   :  { %p1541_p7 = pnand %p1539_p6, %p1536_p5 }
 0x12c   :  { %1544 = shalt.err (!%p1541_p7)
}
 0x12d   :  { %s1548_s13 = smov 128   ;;  %s1549_s14 = smov 8  }
 0x12e   :  { %1254 = dma.vmem_to_hbm [thread:$0]  %s1249_s4, 8192, %s1853_s2, [#allocation3], %s1548_s13, %s1548_s13, %s1549_s14  }
 0x12f   :  { %1545 = dma.done.wait [#allocation3], 8192  }
 0x130   :  { %1546 = vsyncadd [#allocation3], 4294959104 }
 0x131   :  { %1258 = vsyncpa [#allocation3], 1 }

</bundles_post_ra>
